<compile_context>
chip_gen: v7x
topology: tpu7x:2x2x1
jax: 0.10.0
libtpu: 0.0.40
codegen_flags: <defaults>
</compile_context>

<pallas_src>
import functools

import jax
import jax.numpy as jnp
from jax.experimental import pallas as pl
from jax.experimental.pallas import tpu as pltpu


N_FEATURES = 27
N_HIDDEN = (100, 50)
N_CLASSES = 4

# lane/sublane-aligned (padded) sizes used inside the kernel
H1_PAD = 128      # 100 -> 128
H2_PAD = 64       # 50  -> 64
OUT_PAD = 128     # 4   -> 128 (lane-dense output stores)
NEG_BIG = -1e30   # padded-class bias: exp underflows to exactly 0 in f32


def _round_up(n, m):
    return ((n + m - 1) // m) * m


def mlp_kernel(x_ref, w1_ref, b1_ref, w2_ref, b2_ref, w3_ref, b3_ref, o_ref):
    # x_ref: (TB, 27) f32; w1 f32; w2/w3 bf16; biases f32; o_ref: (TB, 128) bf16.
    x = x_ref[...]

    # layer1 + ReLU  (dropout1 = identity in eval). Full f32 matmul: K=27, so
    # the extra MXU passes are negligible and accuracy improves.
    h1 = jnp.dot(x, w1_ref[...], preferred_element_type=jnp.float32) + b1_ref[...]
    h1 = jnp.maximum(h1, 0.0)                                   # (TB, 128) f32

    # layer2 + ReLU  (dropout2 = identity in eval); bf16 MXU, f32 accumulation.
    h2 = jnp.dot(h1.astype(jnp.bfloat16), w2_ref[...],
                 preferred_element_type=jnp.float32) + b2_ref[...]
    h2 = jnp.maximum(h2, 0.0)                                   # (TB, 64) f32

    # out_layer (padded class columns carry bias -1e30 -> exp == 0 below; this
    # requires b3 and the accumulation to stay f32 -- guarded in prepare_params)
    logits = jnp.dot(h2.astype(jnp.bfloat16), w3_ref[...],
                     preferred_element_type=jnp.float32) + b3_ref[...]  # (TB, 128)

    # numerically-stable log_softmax over the last axis (f32), store as bf16
    m = jnp.max(logits, axis=-1, keepdims=True)
    shifted = logits - m
    lse = jnp.log(jnp.sum(jnp.exp(shifted), axis=-1, keepdims=True))
    o_ref[...] = (shifted - lse).astype(o_ref.dtype)


def init_params(key, n_features=N_FEATURES, n_neurons=N_HIDDEN, n_classes=N_CLASSES):
    # Deterministic synthetic init (PyTorch-like uniform scaled by fan-in).
    # Weights stored as [in_features, out_features] so y = x @ W + b.
    dims = [(n_features, n_neurons[0]),
            (n_neurons[0], n_neurons[1]),
            (n_neurons[1], n_classes)]
    params = []
    for (fan_in, fan_out) in dims:
        key, kw, kb = jax.random.split(key, 3)
        bound = 1.0 / (fan_in ** 0.5)
        w = jax.random.uniform(kw, (fan_in, fan_out), jnp.float32, -bound, bound)
        b = jax.random.uniform(kb, (1, fan_out), jnp.float32, -bound, bound)
        params += [w, b]
    return tuple(params)


def prepare_params(params):
    """One-time host-side pad to lane/sublane-aligned shapes. w1 stays f32
    (layer-1 runs in full precision); w2/w3 are cast to bf16 for the MXU;
    all biases remain f32 for the VPU epilogue."""
    w1, b1, w2, b2, w3, b3 = params
    h1, h2 = N_HIDDEN
    w1p = jnp.zeros((N_FEATURES, H1_PAD), jnp.float32).at[:, :h1].set(w1)
    b1p = jnp.zeros((1, H1_PAD), jnp.float32).at[:, :h1].set(b1)
    w2p = jnp.zeros((H1_PAD, H2_PAD), jnp.float32).at[:h1, :h2].set(w2)
    b2p = jnp.zeros((1, H2_PAD), jnp.float32).at[:, :h2].set(b2)
    w3p = jnp.zeros((H2_PAD, OUT_PAD), jnp.float32).at[:h2, :N_CLASSES].set(w3)
    b3p = jnp.full((1, OUT_PAD), NEG_BIG, jnp.float32).at[:, :N_CLASSES].set(b3)
    # The NEG_BIG padded-class trick is only sound while b3 and the logit
    # accumulation stay f32 (exp underflows to exactly 0, max unaffected).
    assert b3p.dtype == jnp.float32
    return (w1p, b1p,
            w2p.astype(jnp.bfloat16), b2p,
            w3p.astype(jnp.bfloat16), b3p)


@functools.partial(jax.jit, static_argnames=("block_b",))
def neural_network_forward(x, padded_params, block_b=2048):
    w1, b1, w2, b2, w3, b3 = padded_params
    assert b3.dtype == jnp.float32  # see NEG_BIG note in prepare_params
    B = x.shape[0]

    # Batch tile: 2048 rows when the batch allows it, otherwise one
    # sublane-aligned tile (multiple of 16) covering the whole batch.
    tb = min(block_b, _round_up(B, 16))
    b_pad = _round_up(B, tb)
    if b_pad != B:
        x = jnp.pad(x, ((0, b_pad - B), (0, 0)))
    # NOTE: x stays f32; the kernel reads it directly (no wrapper-side cast).

    grid = (b_pad // tb,)

    flops = 2 * b_pad * (N_FEATURES * H1_PAD + H1_PAD * H2_PAD + H2_PAD * OUT_PAD)
    bytes_accessed = (x.size * 4
                      + w1.size * 4 + w2.size * 2 + w3.size * 2
                      + sum(b.size * 4 for b in (b1, b2, b3))
                      + b_pad * OUT_PAD * 2)

    out = pl.pallas_call(
        mlp_kernel,
        out_shape=jax.ShapeDtypeStruct((b_pad, OUT_PAD), jnp.bfloat16),
        grid=grid,
        in_specs=[
            # x is streamed per batch tile (double-buffered by the pipeline)
            pl.BlockSpec((tb, N_FEATURES), lambda i: (i, 0)),
            # weights / biases: constant block index -> fetched once, VMEM-resident
            pl.BlockSpec(w1.shape, lambda i: (0, 0)),
            pl.BlockSpec(b1.shape, lambda i: (0, 0)),
            pl.BlockSpec(w2.shape, lambda i: (0, 0)),
            pl.BlockSpec(b2.shape, lambda i: (0, 0)),
            pl.BlockSpec(w3.shape, lambda i: (0, 0)),
            pl.BlockSpec(b3.shape, lambda i: (0, 0)),
        ],
        out_specs=pl.BlockSpec((tb, OUT_PAD), lambda i: (i, 0)),
        compiler_params=pltpu.CompilerParams(
            dimension_semantics=("parallel",),
            vmem_limit_bytes=32 * 1024 * 1024),
        cost_estimate=pl.CostEstimate(
            flops=flops,
            transcendentals=b_pad * (OUT_PAD + 1),
            bytes_accessed=bytes_accessed),
    )(x, w1, b1, w2, b2, w3, b3)

    # drop batch padding and the lane-padded classes
    return out[:B, :N_CLASSES]


def reference_forward(x, params):
    w1, b1, w2, b2, w3, b3 = params
    h1 = jnp.maximum(x @ w1 + b1, 0.0)
    h2 = jnp.maximum(h1 @ w2 + b2, 0.0)
    logits = h2 @ w3 + b3
    return jax.nn.log_softmax(logits, axis=-1)


if __name__ == "__main__":
    key = jax.random.PRNGKey(0)
    key, kx1, kx2 = jax.random.split(key, 3)

    params = init_params(key)
    padded_params = prepare_params(params)

    # --- small-batch check (single tile) ---
    batch = 8
    x = jax.random.normal(kx1, (batch, N_FEATURES), jnp.float32)
    out = jax.block_until_ready(neural_network_forward(x, padded_params))

    assert out.shape == (batch, N_CLASSES)
    row_sums = jnp.sum(jnp.exp(out.astype(jnp.float32)), axis=1)
    assert jnp.allclose(row_sums, 1.0, atol=2e-2)        # bf16 output rounding

    ref = reference_forward(x, params)
    assert jnp.allclose(out.astype(jnp.float32), ref, atol=1e-1), \
        float(jnp.max(jnp.abs(out.astype(jnp.float32) - ref)))

    # --- multi-tile check (exercises the batch grid + padding path) ---
    batch2 = 300
    x2 = jax.random.normal(kx2, (batch2, N_FEATURES), jnp.float32)
    out2 = jax.block_until_ready(
        neural_network_forward(x2, padded_params, block_b=128))
    ref2 = reference_forward(x2, params)
    assert out2.shape == (batch2, N_CLASSES)
    assert jnp.allclose(out2.astype(jnp.float32), ref2, atol=1e-1), \
        float(jnp.max(jnp.abs(out2.astype(jnp.float32) - ref2)))

    print("KERNEL_OK")
</pallas_src>

<mosaic_0001>
module attributes {stable_mosaic.version = 11 : i64} {
  func.func @mlp_kernel(%arg0: i32, %arg1: memref<16x27xf32, #tpu.memory_space<vmem>>, %arg2: memref<27x128xf32, #tpu.memory_space<vmem>>, %arg3: memref<1x128xf32, #tpu.memory_space<vmem>>, %arg4: memref<128x64xbf16, #tpu.memory_space<vmem>>, %arg5: memref<1x64xf32, #tpu.memory_space<vmem>>, %arg6: memref<64x128xbf16, #tpu.memory_space<vmem>>, %arg7: memref<1x128xf32, #tpu.memory_space<vmem>>, %arg8: memref<16x128xbf16, #tpu.memory_space<vmem>>) attributes {dimension_semantics = [#tpu.dimension_semantics<parallel>], iteration_bounds = array<i64: 1>, scalar_prefetch = 0 : i64, scratch_operands = 0 : i64, tpu.core_type = #tpu.core_type<tc>, window_params = [{transform_indices = @transform_0, window_bounds = array<i64: 16, 27>}, {pipeline_mode = #tpu.pipeline_mode<synchronous>, transform_indices = @transform_1, window_bounds = array<i64: 27, 128>}, {pipeline_mode = #tpu.pipeline_mode<synchronous>, transform_indices = @transform_2, window_bounds = array<i64: 1, 128>}, {pipeline_mode = #tpu.pipeline_mode<synchronous>, transform_indices = @transform_3, window_bounds = array<i64: 128, 64>}, {pipeline_mode = #tpu.pipeline_mode<synchronous>, transform_indices = @transform_4, window_bounds = array<i64: 1, 64>}, {pipeline_mode = #tpu.pipeline_mode<synchronous>, transform_indices = @transform_5, window_bounds = array<i64: 64, 128>}, {pipeline_mode = #tpu.pipeline_mode<synchronous>, transform_indices = @transform_6, window_bounds = array<i64: 1, 128>}, {transform_indices = @transform_7, window_bounds = array<i64: 16, 128>}]} {
    %c0 = arith.constant 0 : index
    %c0_0 = arith.constant 0 : index
    %0 = vector.load %arg1[%c0, %c0_0] : memref<16x27xf32, #tpu.memory_space<vmem>>, vector<16x27xf32>
    %c0_1 = arith.constant 0 : index
    %c0_2 = arith.constant 0 : index
    %1 = vector.load %arg2[%c0_1, %c0_2] : memref<27x128xf32, #tpu.memory_space<vmem>>, vector<27x128xf32>
    %cst = arith.constant dense<0.000000e+00> : vector<16x128xf32>
    %2 = tpu.matmul %0, %1, %cst {dimension_numbers = #tpu.dot_dimension_numbers<[1], [0], [0], [1], [0, 0, 1, 1], [], []>} : vector<16x27xf32>, vector<27x128xf32>, vector<16x128xf32> -> vector<16x128xf32>
    %c0_3 = arith.constant 0 : index
    %c0_4 = arith.constant 0 : index
    %3 = vector.load %arg3[%c0_3, %c0_4] : memref<1x128xf32, #tpu.memory_space<vmem>>, vector<1x128xf32>
    %4 = vector.broadcast %3 : vector<1x128xf32> to vector<16x128xf32>
    %5 = arith.addf %2, %4 : vector<16x128xf32>
    %cst_5 = arith.constant 0.000000e+00 : f32
    %6 = vector.broadcast %cst_5 : f32 to vector<16x128xf32>
    %7 = arith.maximumf %5, %6 : vector<16x128xf32>
    %8 = arith.truncf %7 : vector<16x128xf32> to vector<16x128xbf16>
    %c0_6 = arith.constant 0 : index
    %c0_7 = arith.constant 0 : index
    %9 = vector.load %arg4[%c0_6, %c0_7] : memref<128x64xbf16, #tpu.memory_space<vmem>>, vector<128x64xbf16>
    %cst_8 = arith.constant dense<0.000000e+00> : vector<16x64xf32>
    %10 = tpu.matmul %8, %9, %cst_8 {dimension_numbers = #tpu.dot_dimension_numbers<[1], [0], [0], [1], [0, 0, 1, 1], [], []>} : vector<16x128xbf16>, vector<128x64xbf16>, vector<16x64xf32> -> vector<16x64xf32>
    %c0_9 = arith.constant 0 : index
    %c0_10 = arith.constant 0 : index
    %11 = vector.load %arg5[%c0_9, %c0_10] : memref<1x64xf32, #tpu.memory_space<vmem>>, vector<1x64xf32>
    %12 = vector.broadcast %11 : vector<1x64xf32> to vector<16x64xf32>
    %13 = arith.addf %10, %12 : vector<16x64xf32>
    %cst_11 = arith.constant 0.000000e+00 : f32
    %14 = vector.broadcast %cst_11 : f32 to vector<16x64xf32>
    %15 = arith.maximumf %13, %14 : vector<16x64xf32>
    %16 = arith.truncf %15 : vector<16x64xf32> to vector<16x64xbf16>
    %c0_12 = arith.constant 0 : index
    %c0_13 = arith.constant 0 : index
    %17 = vector.load %arg6[%c0_12, %c0_13] : memref<64x128xbf16, #tpu.memory_space<vmem>>, vector<64x128xbf16>
    %cst_14 = arith.constant dense<0.000000e+00> : vector<16x128xf32>
    %18 = tpu.matmul %16, %17, %cst_14 {dimension_numbers = #tpu.dot_dimension_numbers<[1], [0], [0], [1], [0, 0, 1, 1], [], []>} : vector<16x64xbf16>, vector<64x128xbf16>, vector<16x128xf32> -> vector<16x128xf32>
    %c0_15 = arith.constant 0 : index
    %c0_16 = arith.constant 0 : index
    %19 = vector.load %arg7[%c0_15, %c0_16] : memref<1x128xf32, #tpu.memory_space<vmem>>, vector<1x128xf32>
    %20 = vector.broadcast %19 : vector<1x128xf32> to vector<16x128xf32>
    %21 = arith.addf %18, %20 : vector<16x128xf32>
    %cst_17 = arith.constant dense<0xFF800000> : vector<16xf32>
    %22 = vector.multi_reduction <maximumf>, %21, %cst_17 [1] : vector<16x128xf32> to vector<16xf32>
    %23 = vector.shape_cast %22 : vector<16xf32> to vector<16x1xf32>
    %24 = vector.broadcast %23 : vector<16x1xf32> to vector<16x128xf32>
    %25 = arith.subf %21, %24 : vector<16x128xf32>
    %26 = math.exp %25 : vector<16x128xf32>
    %cst_18 = arith.constant dense<0.000000e+00> : vector<16xf32>
    %27 = vector.multi_reduction <add>, %26, %cst_18 [1] : vector<16x128xf32> to vector<16xf32>
    %28 = vector.shape_cast %27 : vector<16xf32> to vector<16x1xf32>
    %29 = math.log %28 : vector<16x1xf32>
    %30 = vector.broadcast %29 : vector<16x1xf32> to vector<16x128xf32>
    %31 = arith.subf %25, %30 : vector<16x128xf32>
    %32 = arith.truncf %31 : vector<16x128xf32> to vector<16x128xbf16>
    %c0_19 = arith.constant 0 : index
    %c0_20 = arith.constant 0 : index
    %33 = vector.load %arg8[%c0_19, %c0_20] : memref<16x128xbf16, #tpu.memory_space<vmem>>, vector<16x128xbf16>
    tpu.vector_store %arg8[%c0_19, %c0_20], %32 {strides = array<i32>} : memref<16x128xbf16, #tpu.memory_space<vmem>>, vector<16x128xbf16>,
    return
  }
  func.func @transform_0(%arg0: i32) -> (i32, i32) {
    %c0_i32 = arith.constant 0 : i32
    %c0_i32_0 = arith.constant 0 : i32
    return %arg0, %c0_i32 : i32, i32
  }
  func.func @transform_1(%arg0: i32) -> (i32, i32) {
    %c0_i32 = arith.constant 0 : i32
    %c0_i32_0 = arith.constant 0 : i32
    %c0_i32_1 = arith.constant 0 : i32
    return %c0_i32, %c0_i32_0 : i32, i32
  }
  func.func @transform_2(%arg0: i32) -> (i32, i32) {
    %c0_i32 = arith.constant 0 : i32
    %c0_i32_0 = arith.constant 0 : i32
    %c0_i32_1 = arith.constant 0 : i32
    return %c0_i32, %c0_i32_0 : i32, i32
  }
  func.func @transform_3(%arg0: i32) -> (i32, i32) {
    %c0_i32 = arith.constant 0 : i32
    %c0_i32_0 = arith.constant 0 : i32
    %c0_i32_1 = arith.constant 0 : i32
    return %c0_i32, %c0_i32_0 : i32, i32
  }
  func.func @transform_4(%arg0: i32) -> (i32, i32) {
    %c0_i32 = arith.constant 0 : i32
    %c0_i32_0 = arith.constant 0 : i32
    %c0_i32_1 = arith.constant 0 : i32
    return %c0_i32, %c0_i32_0 : i32, i32
  }
  func.func @transform_5(%arg0: i32) -> (i32, i32) {
    %c0_i32 = arith.constant 0 : i32
    %c0_i32_0 = arith.constant 0 : i32
    %c0_i32_1 = arith.constant 0 : i32
    return %c0_i32, %c0_i32_0 : i32, i32
  }
  func.func @transform_6(%arg0: i32) -> (i32, i32) {
    %c0_i32 = arith.constant 0 : i32
    %c0_i32_0 = arith.constant 0 : i32
    %c0_i32_1 = arith.constant 0 : i32
    return %c0_i32, %c0_i32_0 : i32, i32
  }
  func.func @transform_7(%arg0: i32) -> (i32, i32) {
    %c0_i32 = arith.constant 0 : i32
    %c0_i32_0 = arith.constant 0 : i32
    return %arg0, %c0_i32 : i32, i32
  }
}

</mosaic_0001>

<bundles_post_ra>
// kernel: neural_network_forward.1
= control target key start
LH: loop header
LB: loop body
LE: loop exit
PB: predicated region body
PF: predicated region fallthrough
CT: control target
= control target key end

     0   :  { %vm47_vm0 = vcmask 1042432   ;;  %vm40_vm1 = vcmask 220160   ;;  %v486_v3 = vmov 0.0   ;;  %vm487_vm2 = vmmov 1   ;;  %s597_s1 = inlined_call_operand.vmem [shape: f32[27,128], index: 1, kind: input, shape index: {}]   ;;  %s598_s0 = inlined_call_operand.vmem [shape: f32[16,27], index: 0, kind: input, shape index: {}]   ;;  %s599_s3 = inlined_call_operand.vmem [shape: bf16[128,64], index: 3, kind: input, shape index: {}]   ;;  %s600_s5 = inlined_call_operand.vmem [shape: bf16[64,128], index: 5, kind: input, shape index: {}]   ;;  %s601_s2 = inlined_call_operand.vmem [shape: f32[1,128], index: 2, kind: input, shape index: {}]   ;;  %s602_s4 = inlined_call_operand.vmem [shape: f32[1,64], index: 4, kind: input, shape index: {}]   ;;  %s603_s6 = inlined_call_operand.vmem [shape: f32[1,128], index: 6, kind: input, shape index: {}]   ;;  %s604_s7 = inlined_call_operand.vmem [shape: bf16[16,128], index: 7, kind: output, shape index: {}]  }
   0x1   :  { %v29_v0 = vld [vmem:[%s597_s1] sm:$0xff]  ;;  %v30_v1 = vld [vmem:[%s597_s1 + $0x8] sm:$0xff]  ;;  %v31_v2 = vld [vmem:[%s597_s1 + $0x10] sm:$0xff]  ;;  %421 = vmatprep.subr.bf16.mxu1 %v486_v3  ;;  %vm488_vm4 = vmmov 0   ;;  %vm283_vm5 = vcmask 523264  }
   0x2   :  { %v453_v4 = vpack.c.bf16 %v30_v1, %v29_v0  ;;  %v32_v5 = vld [vmem:[%s597_s1 + $0x18] sm:$0x7]  ;;  %v27_v6 = vld [vmem:[%s598_s0] sm:$0xff]  ;;  %vm458_vm3 = vmpackc.low %vm47_vm0, %vm487_vm2  ;;  %437 = vmatprep.mubr.msk.bf16.mxu1 %vm488_vm4, %v486_v3 }
   0x3   :  { %v457_v7 = vpack.c.bf16 %v32_v5, %v31_v2  ;;  %418 = vmatprep.mubr.msk.f32.mxu0 %vm40_vm1, %v27_v6  ;;  %v466_v8 = vld [vmem:[%s599_s3] sm:$0xff]   ;;  %v467_v9 = vld [vmem:[%s599_s3 + $0x8] sm:$0xff]   ;;  %v468_v11 = vld [vmem:[%s599_s3 + $0x10] sm:$0xff]  }
   0x4   :  { %454 = vmatprep.subr.bf16.mxu0 %v453_v4  ;;  %422 = vmatpush3.bf16.msra.mxu1 %v466_v8  ;;  %v28_v10 = vld [vmem:[%s598_s0 + $0x8] sm:$0xff]  ;;  %v469_v12 = vld [vmem:[%s599_s3 + $0x18] sm:$0xff]   ;;  %v470_v13 = vld [vmem:[%s599_s3 + $0x20] sm:$0xff]  }
   0x5   :  { %456 = vmatpush3.bf16.msra.mxu0 %v453_v4  ;;  %423 = vmatprep.subr.bf16.mxu1 %v486_v3  ;;  %v471_v14 = vld [vmem:[%s599_s3 + $0x28] sm:$0xff]   ;;  %v472_v15 = vld [vmem:[%s599_s3 + $0x30] sm:$0xff]   ;;  %v473_v16 = vld [vmem:[%s599_s3 + $0x38] sm:$0xff]  }
   0x6   :  { %459 = vmatprep.subr.msk.bf16.mxu0 %vm458_vm3, %v457_v7  ;;  %v474_v17 = vld [vmem:[%s600_s5] sm:$0xff]   ;;  %v475_v18 = vld [vmem:[%s600_s5 + $0x8] sm:$0xff]   ;;  %v476_v27 = vld [vmem:[%s600_s5 + $0x10] sm:$0xff]  }
   0x7   :  { %v362_v19 = vld [vmem:[%s601_s2] ss:$0 sm:$0xff]  ;;  %v477_v28 = vld [vmem:[%s600_s5 + $0x18] sm:$0xff]  }
   0x8   :  { %424 = vmatpush3.bf16.msra.mxu1 %v467_v9  ;;  %v366_v29 = vld [vmem:[%s602_s4] ss:$0 sm:$0xff] }
   0x9   :  { %462 = vmatpush3.bf16.msk.msra.mxu0 %vm458_vm3, %v457_v7  ;;  %425 = vmatprep.subr.bf16.mxu1 %v486_v3  ;;  %v375_v39 = vld [vmem:[%s603_s6] ss:$0 sm:$0xff] }
   0xa   :  { %441 = vmatprep.subr.bf16.mxu0 %v486_v3 }
   0xc   :  { %419 = vmatmul.mubr.msk.f32.vlgmr.msra.gmra.mrb[0].mxu0 %vm40_vm1, %v28_v10  ;;  %426 = vmatpush3.bf16.msra.mxu1 %v468_v11 }
   0xd   :  { %427 = vmatprep.subr.bf16.mxu1 %v486_v3  ;;  %449 = vmatprep.mubr.msk.bf16.mxu0 %vm488_vm4, %v486_v3 }
   0xe   :  { %442 = vmatpush3.bf16.msra.mxu0 %v474_v17 }
   0xf   :  { %443 = vmatprep.subr.bf16.mxu0 %v486_v3 }
  0x10   :  { %428 = vmatpush3.bf16.msra.mxu1 %v469_v12 }
  0x11   :  { %429 = vmatprep.subr.bf16.mxu1 %v486_v3 }
  0x12   :  { %444 = vmatpush3.bf16.msra.mxu0 %v475_v18 }
  0x13   :  { %445 = vmatprep.subr.bf16.mxu0 %v486_v3 }
  0x14   :  { %430 = vmatpush3.bf16.msra.mxu1 %v470_v13 }
  0x15   :  { %431 = vmatprep.subr.bf16.mxu1 %v486_v3 }
  0x16   :  { %446 = vmatpush3.bf16.msra.mxu0 %v476_v27 }
  0x17   :  { %447 = vmatprep.subr.bf16.mxu0 %v486_v3 }
  0x18   :  { %432 = vmatpush3.bf16.msra.mxu1 %v471_v14 }
  0x19   :  { %433 = vmatprep.subr.bf16.mxu1 %v486_v3 }
  0x1a   :  { %448 = vmatpush3.bf16.msra.mxu0 %v477_v28 }
  0x1c   :  { %434 = vmatpush3.bf16.msra.mxu1 %v472_v15 }
  0x1d   :  { %435 = vmatprep.subr.bf16.mxu1 %v486_v3 }
  0x20   :  { %436 = vmatpush3.bf16.msra.mxu1 %v473_v16 }
  0xdf   :  { %v420_v20 = vpop.f32.mrb[0].mxu0 }
  0xe0   :  { %v123_v21 = vadd.f32 %v420_v20, %v362_v19  ;;  %v117_v22 = vpop.f32.mrb[1].mxu0 }
  0xe1   :  { %v118_v23 = vadd.f32 %v362_v19, %v117_v22 }
  0xe2   :  { %v127_v24 = vmax.f32 %v123_v21, 0.0 }
  0xe3   :  { %v126_v25 = vmax.f32 %v118_v23, 0.0 }
  0xe5   :  { %v128_v26 = vpack.c.bf16 %v127_v24, %v126_v25 }
  0xe7   :  { %438 = vmatmul.mubr.bf16.vlgmr.msra.gmra.mrb[0].mxu1 %v128_v26 }
 0x1ba   :  { %v234_v30 = vpop.f32.mrb[0].mxu1 }
 0x1bb   :  { %v235_v31 = vadd.f32 %v366_v29, %v234_v30  ;;  %v439_v32 = vpop.f32.mrb[1].mxu1 }
 0x1bc   :  { %v237_v33 = vpop.f32.mrb[2].mxu1 }
 0x1bd   :  { %v238_v34 = vadd.f32 %v366_v29, %v237_v33  ;;  %v440_v35 = vpop.f32.mrb[3].mxu1  ;;  %v241_v36 = vmax.f32 %v235_v31, 0.0 }
 0x1bf   :  { %v242_v37 = vmax.f32 %v238_v34, 0.0 }
 0x1c1   :  { %v243_v38 = vpack.c.bf16 %v242_v37, %v241_v36 }
 0x1c3   :  { %450 = vmatmul.mubr.msk.bf16.vlgmr.msra.gmra.mrb[4].mxu0 %vm283_vm5, %v243_v38 }
 0x296   :  { %v321_v40 = vpop.f32.mrb[4].mxu0 }
 0x297   :  { %v322_v41 = vadd.f32 %v375_v39, %v321_v40  ;;  %v451_v42 = vpop.f32.mrb[5].mxu0 }
 0x298   :  { %v324_v43 = vpop.f32.mrb[6].mxu0 }
 0x299   :  { %328 = vmax.xlane.f32.xlu0 %v322_v41  ;;  %v452_v44 = vpop.f32.mrb[7].mxu0  ;;  %v325_v45 = vadd.f32 %v375_v39, %v324_v43 }
 0x29d   :  { %330 = vmax.xlane.f32.xlu0 %v325_v45 }
 0x326   :  { %v329_v46 = vpop.xlane.xlu0 %328 }
 0x327   :  { %v332_v47 = vsub.f32 %v322_v41, %v329_v46 }
 0x329   :  { %v334_v48 = vmul.f32 1.442695, %v332_v47 }
 0x32a   :  { %v331_v49 = vpop.xlane.xlu0 %330 }
 0x32b   :  { %v333_v50 = vsub.f32 %v325_v45, %v331_v49  ;;  %478 = vpow2.f32 %v334_v48 }
 0x32d   :  { %v336_v51 = vmul.f32 1.442695, %v333_v50 }
 0x32f   :  { %480 = vpow2.f32 %v336_v51 }
 0x335   :  { %v479_v52 = vpop.eup %478 }
 0x336   :  { %338 = vadd.xlane.f32.xlu1 %v479_v52 }
 0x339   :  { %v481_v53 = vpop.eup %480 }
 0x33a   :  { %340 = vadd.xlane.f32.xlu1 %v481_v53 }
 0x3c3   :  { %v339_v54 = vpop.xlane.xlu1 %338 }
 0x3c4   :  { %482 = vlog2.f32 %v339_v54 }
 0x3c7   :  { %v341_v55 = vpop.xlane.xlu1 %340 }
 0x3c8   :  { %484 = vlog2.f32 %v341_v55 }
 0x3ce   :  { %v483_v56 = vpop.eup %482 }
 0x3cf   :  { %v343_v57 = vmul.f32 0.6931472, %v483_v56 }
 0x3d1   :  { %v346_v60 = vsub.f32 %v332_v47, %v343_v57 }
 0x3d2   :  { %v485_v58 = vpop.eup %484 }
 0x3d3   :  { %v345_v59 = vmul.f32 0.6931472, %v485_v58 }
 0x3d5   :  { %v347_v61 = vsub.f32 %v333_v50, %v345_v59 }
 0x3d7   :  { %v388_v62 = vpack.c.bf16 %v347_v61, %v346_v60 }
 0x3d9   :  { %389 = vst [vmem:[%s604_s7] sm:$0xff] %v388_v62  }

</bundles_post_ra>
